<compile_context>
chip_gen: v5e
topology: v5e:2x2
jax: 0.10.0
libtpu: 0.0.40
codegen_flags: <defaults>
</compile_context>

<pallas_src>
import jax
import jax.numpy as jnp
from jax import lax
from jax.experimental import pallas as pl
from jax.experimental.pallas import tpu as pltpu


def _round_up(a, b):
    return (a + b - 1) // b * b


def _cdiv(a, b):
    return (a + b - 1) // b


def _conv_matmul_kernel(w_ref, p_ref, o_ref):
    # w_ref: (Cout_p, KC_p) bf16 resident weight
    # p_ref: (1, KC_p, TS)  bf16 patch tile (one batch element, TS output voxels)
    # o_ref: (1, Cout_p, TS) output tile -- single MXU dot, f32 accumulation,
    #        lane-dense store of only the real output channels.
    o_ref[0] = jnp.dot(w_ref[...], p_ref[0],
                       preferred_element_type=jnp.float32).astype(o_ref.dtype)


def backbone_downsampling(x_ncdhw, weight_oidhw, *, stride=2, padding=1,
                          compute_dtype=jnp.bfloat16, tile_s=2048):
    """Conv3d(in->out, kernel=K, stride, padding, bias=False) on NCDHW input."""
    N, Cin, D, H, W = x_ncdhw.shape
    Cout, Cin_w, K, K2, K3 = weight_oidhw.shape
    assert Cin == Cin_w and K == K2 == K3

    OD = (D + 2 * padding - K) // stride + 1
    OH = (H + 2 * padding - K) // stride + 1
    OW = (W + 2 * padding - K) // stride + 1
    S = OD * OH * OW          # output voxels per batch element
    KC = Cin * K * K * K      # contraction size

    # ---- wrapper glue: cast to bf16 FIRST, then pad + im2col (no transposes) --
    x = x_ncdhw.astype(compute_dtype)
    xp = jnp.pad(x, ((0, 0), (0, 0),
                     (padding, padding), (padding, padding), (padding, padding)))
    taps = []
    for kd in range(K):
        for kh in range(K):
            for kw in range(K):
                taps.append(xp[:, :, kd:kd + stride * (OD - 1) + 1:stride,
                               kh:kh + stride * (OH - 1) + 1:stride,
                               kw:kw + stride * (OW - 1) + 1:stride])
    # (N, Cin, K^3, OD, OH, OW) -> (N, Cin*K^3, S): contiguous reshape.
    patches = jnp.stack(taps, axis=2).reshape(N, KC, S)

    # weight: (Cout, Cin, K, K, K) -> (Cout, Cin*K^3); same (cin, tap) ordering.
    w = weight_oidhw.reshape(Cout, KC).astype(compute_dtype)

    # ---- pad / tile to TPU-friendly sizes -------------------------------------
    KC_pad = _round_up(KC, 16)           # bf16 sublane packing for the patch tile
    Cout_pad = _round_up(Cout, 8)        # f32 output sublane alignment
    TS = min(tile_s, _round_up(S, 128))  # lane-dense spatial tile
    if N * _cdiv(S, TS) < 2 and TS > 128:
        TS = _round_up(TS // 2, 128)     # keep >=2 grid steps (v7x has 2 TCs)
    S_pad = _round_up(S, TS)

    patches = jnp.pad(patches, ((0, 0), (0, KC_pad - KC), (0, S_pad - S)))
    w = jnp.pad(w, ((0, Cout_pad - Cout), (0, KC_pad - KC)))

    out_dtype = x_ncdhw.dtype
    grid = (N, S_pad // TS)

    # explicit VMEM budget: double-buffered patch / weight / output tiles + headroom
    itm = jnp.dtype(compute_dtype).itemsize
    oit = jnp.dtype(out_dtype).itemsize
    tile_bytes = (2 * KC_pad * TS * itm        # patch tile (double buffered)
                  + 2 * Cout_pad * KC_pad * itm  # resident weight (2 bufs alloc'd)
                  + 2 * Cout_pad * TS * oit)     # output tile (double buffered)
    try:
        vmem_cap = int(pltpu.get_tpu_info().vmem_capacity_bytes * 3 // 4)
    except Exception:
        vmem_cap = 48 << 20                   # safe on v7x (64 MiB/TC) and below
    vmem_limit = int(min(max(4 * tile_bytes, 8 << 20), vmem_cap))

    out = pl.pallas_call(
        _conv_matmul_kernel,
        out_shape=jax.ShapeDtypeStruct((N, Cout_pad, S_pad), out_dtype),
        grid_spec=pltpu.PrefetchScalarGridSpec(
            num_scalar_prefetch=0,
            grid=grid,
            in_specs=[
                # weight: constant block index -> fetched once, resident in VMEM
                pl.BlockSpec((Cout_pad, KC_pad), lambda n, s: (0, 0)),
                # patch tile: one batch element, full contraction, TS spatial cols
                pl.BlockSpec((1, KC_pad, TS), lambda n, s: (n, 0, s)),
            ],
            out_specs=pl.BlockSpec((1, Cout_pad, TS), lambda n, s: (n, 0, s)),
        ),
        compiler_params=pltpu.CompilerParams(
            dimension_semantics=("parallel", "parallel"),
            vmem_limit_bytes=vmem_limit,
            allow_input_fusion=[True, True]),   # fuse patch/weight producers
    )(w, patches)

    # ---- wrapper glue: drop padding, reshape to NCDHW (no transpose needed) ---
    out = out[:, :Cout, :S].reshape(N, Cout, OD, OH, OW)
    return out


if __name__ == "__main__":
    key = jax.random.PRNGKey(0)
    kx, kw = jax.random.split(key)

    # Small shapes consistent with the module: batch=2, Cin=4, Cout=8, spatial=16
    N, Cin, D, H, W = 2, 4, 16, 16, 16
    Cout, K = 8, 3
    x = jax.random.normal(kx, (N, Cin, D, H, W), dtype=jnp.float32)
    weight = jax.random.normal(kw, (Cout, Cin, K, K, K), dtype=jnp.float32)
    weight = weight * (2.0 / (Cin * K * K * K)) ** 0.5

    fn = jax.jit(lambda a, b: backbone_downsampling(a, b, stride=2, padding=1))
    out = jax.block_until_ready(fn(x, weight))

    # Reference: same bf16-rounded operands, f32 accumulation, via XLA's 3-D conv
    # (same semantics as nn.Conv3d, bias=False).
    ref = lax.conv_general_dilated(
        x.astype(jnp.bfloat16), weight.astype(jnp.bfloat16),
        window_strides=(2, 2, 2),
        padding=((1, 1), (1, 1), (1, 1)),
        dimension_numbers=("NCDHW", "OIDHW", "NCDHW"),
        preferred_element_type=jnp.float32)

    assert out.shape == ref.shape == (N, Cout, 8, 8, 8), out.shape
    err = float(jnp.max(jnp.abs(out.astype(jnp.float32) - ref)))
    assert err < 2e-2, err
    print("KERNEL_OK")
</pallas_src>

<mosaic_0001>
module attributes {stable_mosaic.version = 11 : i64} {
  func.func @_conv_matmul_kernel(%arg0: i32, %arg1: i32, %arg2: memref<8x112xbf16, #tpu.memory_space<vmem>>, %arg3: memref<1x112x512xbf16, #tpu.memory_space<vmem>>, %arg4: memref<1x8x512xf32, #tpu.memory_space<vmem>>) attributes {dimension_semantics = [#tpu.dimension_semantics<parallel>, #tpu.dimension_semantics<parallel>], iteration_bounds = array<i64: 2, 1>, scalar_prefetch = 0 : i64, scratch_operands = 0 : i64, tpu.core_type = #tpu.core_type<tc>, window_params = [{pipeline_mode = #tpu.pipeline_mode<synchronous>, transform_indices = @transform_0, window_bounds = array<i64: 8, 112>}, {transform_indices = @transform_1, window_bounds = array<i64: 1, 112, 512>}, {transform_indices = @transform_2, window_bounds = array<i64: 1, 8, 512>}]} {
    %c0 = arith.constant 0 : index
    %c0_0 = arith.constant 0 : index
    %0 = vector.load %arg2[%c0, %c0_0] : memref<8x112xbf16, #tpu.memory_space<vmem>>, vector<8x112xbf16>
    %c0_1 = arith.constant 0 : index
    %c0_2 = arith.constant 0 : index
    %c0_3 = arith.constant 0 : index
    %1 = vector.load %arg3[%c0_1, %c0_2, %c0_3] : memref<1x112x512xbf16, #tpu.memory_space<vmem>>, vector<1x112x512xbf16>
    %2 = vector.shape_cast %1 : vector<1x112x512xbf16> to vector<112x512xbf16>
    %cst = arith.constant dense<0.000000e+00> : vector<8x512xf32>
    %3 = tpu.matmul %0, %2, %cst {dimension_numbers = #tpu.dot_dimension_numbers<[1], [0], [0], [1], [0, 0, 1, 1], [], []>} : vector<8x112xbf16>, vector<112x512xbf16>, vector<8x512xf32> -> vector<8x512xf32>
    %c0_4 = arith.constant 0 : index
    %c0_5 = arith.constant 0 : index
    %c0_6 = arith.constant 0 : index
    %4 = vector.load %arg4[%c0_4, %c0_5, %c0_6] : memref<1x8x512xf32, #tpu.memory_space<vmem>>, vector<1x8x512xf32>
    %5 = vector.shape_cast %4 : vector<1x8x512xf32> to vector<8x512xf32>
    %6 = vector.shape_cast %3 : vector<8x512xf32> to vector<1x8x512xf32>
    tpu.vector_store %arg4[%c0_4, %c0_5, %c0_6], %6 {strides = array<i32>} : memref<1x8x512xf32, #tpu.memory_space<vmem>>, vector<1x8x512xf32>,
    return
  }
  func.func @transform_0(%arg0: i32, %arg1: i32) -> (i32, i32) {
    %c0_i32 = arith.constant 0 : i32
    %c0_i32_0 = arith.constant 0 : i32
    %c0_i32_1 = arith.constant 0 : i32
    return %c0_i32, %c0_i32_0 : i32, i32
  }
  func.func @transform_1(%arg0: i32, %arg1: i32) -> (i32, i32, i32) {
    %c0_i32 = arith.constant 0 : i32
    %c0_i32_0 = arith.constant 0 : i32
    return %arg0, %c0_i32, %arg1 : i32, i32, i32
  }
  func.func @transform_2(%arg0: i32, %arg1: i32) -> (i32, i32, i32) {
    %c0_i32 = arith.constant 0 : i32
    %c0_i32_0 = arith.constant 0 : i32
    return %arg0, %c0_i32, %arg1 : i32, i32, i32
  }
}

</mosaic_0001>

<bundles_post_ra>
// kernel: _lambda_.2
= control target key start
LH: loop header
LB: loop body
LE: loop exit
PB: predicated region body
PF: predicated region fallthrough
CT: control target
= control target key end

     0   :  { %s1884_s14 = smov 0   ;;  %s1886_s15 = smov 0   ;;  %s1968_s0 = inlined_call_operand.vmem [shape: bf16[2,108,512], index: 0, kind: input, shape index: {}]   ;;  %s1969_s1 = inlined_call_operand.<no memory space> [shape: bf16[], index: 1, kind: input, shape index: {}]   ;;  %s1970_s2 = inlined_call_operand.vmem [shape: bf16[8,108], index: 2, kind: input, shape index: {}]   ;;  %s1971_s3 = inlined_call_operand.vmem [shape: f32[2,8,512], index: 3, kind: output, shape index: {}]  }
   0x1   :  { %v8_v0 = vstv %s1969_s1  ;;  %s1888_s16 = smov 0  }
   0x2   :  { %v1882_v1 = vunpack.i.l.bf16 %v8_v0 }
   0x3 LB: > { %s35_s1 = sadd.s32 1, %s1853_s15  ;;  %p1354_p0 = scmp.ge.s32.totalorder %s1857_s16, 1  ;;  %s1857_s16 = sphi %s1888_s16, %s23_s16   ;;  %s1853_s15 = sphi %s1886_s15, %s1973_s15   ;;  %s1849_s14 = sphi %s1884_s14, %s1972_s14  }
   0x4   : > { %p37_p1 = scmp.ge.s32.totalorder %s35_s1, 2  ;;  %p144_p2 = scmp.lt.s32.totalorder %s1857_s16, 3 }
   0x6   : > { %s1975_s1 = smov (%p37_p1, %s35_s1), 0  ;;  %p145_p3 = pnand %p1354_p0, %p144_p2 }
   0x8   : > { %148 = sbr.rel (%p145_p3) target bundleno = 205 (0xcd), region = 28 }
   0xd   : > { %p175_p4 = scmp.lt.s32.totalorder %s1849_s14, 1  ;;  %v206_v2 = vlaneseq  ;;  %v203_v51 = vld [vmem:[%s1970_s2] sm:$0xf]  ;;  %vm1203_vm2 = vcmask 916480  }
   0xf   : > { %s1977_s14 = smov (!%p175_p4, %s1849_s14), 1  ;;  %v955_v3 = vshrl.u32 %v206_v2, 7  ;;  %v1929_v29 = vand.u32 127, %v206_v2 }
  0x10   : > { %s1810_s17 = smul.u32 224, %s1977_s14  ;;  %s1531_s23 = sshll.u32 %s1977_s14, 5 }
  0x11   : > { %v956_v4 = vadd.s32 104, %v955_v3  ;;  %vm209_vm1 = vcmp.lt.s32.totalorder %v1929_v29, 108  ;;  %s192_s26 = scalar_lea.vmem %s1971_s3, %s1531_s23 }
  0x12   : > { %s1908_s20 = scalar_lea.vmem %s1968_s0, %s1810_s17 }
  0x13   : > { %v1808_v5 = vld [vmem:[%s1908_s20 + $0xc0] sm:$0xff]  ;;  %v1409_v6 = vld [vmem:[%s1908_s20 + $0xd0] sm:$0xff]   ;;  %vm957_vm0 = vcmp.lt.s32.totalorder %v956_v4, 108  ;;  %v1809_v7 = vld [vmem:[%s1908_s20 + $0xc8] sm:$0xff] }
  0x14   : > { %v952_v8 = vunpack.c.l.bf16 %v1409_v6  ;;  %v975_v9 = vunpack.c.h.bf16 %v1409_v6  ;;  %v1411_v10 = vld [vmem:[%s1908_s20 + $0xd8] sm:$0xff]   ;;  %v1804_v11 = vld [vmem:[%s1908_s20 + $0xa0] sm:$0xff]  ;;  %v1806_v12 = vld [vmem:[%s1908_s20 + $0xb0] sm:$0xff]  ;;  %1679 = vst [vmem:[#allocation13 + $0xc0] sm:$0xff] %v1808_v5  }
  0x15   : > { %v998_v13 = vunpack.c.l.bf16 %v1411_v10  ;;  %v1021_v14 = vunpack.c.h.bf16 %v1411_v10  ;;  %1684 = vst [vmem:[#allocation13 + $0xc8] sm:$0xff] %v1809_v7   ;;  %v1805_v23 = vld [vmem:[%s1908_s20 + $0xa8] sm:$0xff]  ;;  %v1807_v24 = vld [vmem:[%s1908_s20 + $0xb8] sm:$0xff]  ;;  %v1800_v25 = vld [vmem:[%s1908_s20 + $0x80] sm:$0xff]  ;;  %v204_v10 = vunpack.c.l.bf16 %v203_v51 }
  0x16   : > { %v958_v15 = vsel %vm957_vm0, %v952_v8, %v1882_v1  ;;  %v981_v16 = vsel %vm957_vm0, %v975_v9, %v1882_v1  ;;  %1659 = vst [vmem:[#allocation13 + $0xa0] sm:$0xff] %v1804_v11   ;;  %v1802_v26 = vld [vmem:[%s1908_s20 + $0x90] sm:$0xff]  ;;  %v1801_v28 = vld [vmem:[%s1908_s20 + $0x88] sm:$0xff]  ;;  %v1803_v32 = vld [vmem:[%s1908_s20 + $0x98] sm:$0xff] }
  0x17   : > { %v960_v17 = vpack.c.bf16 0.0, %v958_v15  ;;  %v983_v18 = vpack.c.bf16 0.0, %v981_v16  ;;  %v1004_v19 = vsel %vm957_vm0, %v998_v13, %v1882_v1  ;;  %v1027_v20 = vsel %vm957_vm0, %v1021_v14, %v1882_v1  ;;  %1669 = vst [vmem:[#allocation13 + $0xb0] sm:$0xff] %v1806_v12   ;;  %v1796_v36 = vld [vmem:[%s1908_s20 + $0x60] sm:$0xff]  ;;  %v1798_v39 = vld [vmem:[%s1908_s20 + $0x70] sm:$0xff]  ;;  %v1797_v43 = vld [vmem:[%s1908_s20 + $0x68] sm:$0xff] }
  0x18   : > { %v1006_v21 = vpack.c.bf16 0.0, %v1004_v19  ;;  %v1029_v22 = vpack.c.bf16 0.0, %v1027_v20  ;;  %1664 = vst [vmem:[#allocation13 + $0xa8] sm:$0xff] %v1805_v23   ;;  %v1799_v46 = vld [vmem:[%s1908_s20 + $0x78] sm:$0xff]  ;;  %v1792_v50 = vld [vmem:[%s1908_s20 + $0x40] sm:$0xff]  ;;  %v1794_v56 = vld [vmem:[%s1908_s20 + $0x50] sm:$0xff] }
  0x19   : > { %963 = vst [vmem:[#allocation13 + $0xd0] sm:$0xf] %v960_v17  ;;  %v1793_v59 = vld [vmem:[%s1908_s20 + $0x48] sm:$0xff]  ;;  %v1795_v0 = vld [vmem:[%s1908_s20 + $0x58] sm:$0xff]  ;;  %v1788_v4 = vld [vmem:[%s1908_s20 + $0x20] sm:$0xff] }
  0x1a   : > { %986 = vst [vmem:[#allocation13 + $0xd4] sm:$0xf] %v983_v18  ;;  %v1790_v9 = vld [vmem:[%s1908_s20 + $0x30] sm:$0xff]  ;;  %v1789_v13 = vld [vmem:[%s1908_s20 + $0x28] sm:$0xff]  ;;  %v1791_v18 = vld [vmem:[%s1908_s20 + $0x38] sm:$0xff] }
  0x1b   : > { %1009 = vst [vmem:[#allocation13 + $0xd8] sm:$0xf] %v1006_v21  ;;  %v1511_v27 = vld [vmem:[#allocation13 + $0xc0] sm:$0xf]  ;;  %v1556_v30 = vld [vmem:[#allocation13 + $0xc4] sm:$0xf] }
  0x1c   : > { %1032 = vst [vmem:[#allocation13 + $0xdc] sm:$0xf] %v1029_v22  ;;  %v1519_v31 = vld [vmem:[#allocation13 + $0xc8] sm:$0xf]  ;;  %v1557_v33 = vld [vmem:[#allocation13 + $0xcc] sm:$0xf] }
  0x1d   : > { %1674 = vst [vmem:[#allocation13 + $0xb8] sm:$0xff] %v1807_v24   ;;  %v1495_v34 = vld [vmem:[#allocation13 + $0xa0] sm:$0xf]  ;;  %v1552_v35 = vld [vmem:[#allocation13 + $0xa4] sm:$0xf] }
  0x1e   : > { %1639 = vst [vmem:[#allocation13 + $0x80] sm:$0xff] %v1800_v25   ;;  %v1554_v38 = vld [vmem:[#allocation13 + $0xac] sm:$0xf0]  ;;  %v1497_v42 = vld [vmem:[#allocation13 + $0xb0] sm:$0xf0]  ;;  %v215_v21 = vld [vmem:[%s1908_s20] sm:$0xff]  }
  0x1f   : > { %1649 = vst [vmem:[#allocation13 + $0x90] sm:$0xff] %v1802_v26   ;;  %v1496_v49 = vor.u32 %v1554_v38, %v1495_v34  ;;  %v1500_v53 = vor.u32 %v1552_v35, %v1497_v42  ;;  %v1503_v54 = vld [vmem:[#allocation13 + $0xa8] sm:$0xf]  ;;  %v1553_v55 = vld [vmem:[#allocation13 + $0xac] sm:$0xf] }
  0x20   : > { %v1558_v37 = vld [vmem:[#allocation13 + $0xcc] sm:$0xf0]  ;;  %1644 = vst [vmem:[#allocation13 + $0x88] sm:$0xff] %v1801_v28  }
  0x21   : > { %v1512_v40 = vor.u32 %v1558_v37, %v1511_v27  ;;  %v1513_v41 = vld [vmem:[#allocation13 + $0xd0] sm:$0xf0]  ;;  %1654 = vst [vmem:[#allocation13 + $0x98] sm:$0xff] %v1803_v32   ;;  %v1786_v26 = vld [vmem:[%s1908_s20 + $0x10] sm:$0xff]  ;;  %v210_v27 = vsel %vm209_vm1, %v204_v10, %v1882_v1 }
  0x22   : > { %v1516_v44 = vor.u32 %v1556_v30, %v1513_v41  ;;  %v1559_v45 = vld [vmem:[#allocation13 + $0xd4] sm:$0xf0]  ;;  %1619 = vst [vmem:[#allocation13 + $0x60] sm:$0xff] %v1796_v36  }
  0x23   : > { %1208 = vmatpush.bf16.msra.mxu0 %v1512_v40  ;;  %v1520_v47 = vor.u32 %v1559_v45, %v1519_v31  ;;  %v1521_v48 = vld [vmem:[#allocation13 + $0xd8] sm:$0xf0]  ;;  %1629 = vst [vmem:[#allocation13 + $0x70] sm:$0xff] %v1798_v39   ;;  %v1785_v31 = vld [vmem:[%s1908_s20 + $0x8] sm:$0xff]  ;;  %v1787_v36 = vld [vmem:[%s1908_s20 + $0x18] sm:$0xff]  ;;  %v211_v39 = vpack.c.bf16 0.0, %v210_v27 }
  0x24   : > { %1221 = vmatpush.bf16.msra.mxu1 %v1516_v44  ;;  %v1524_v52 = vor.u32 %v1557_v33, %v1521_v48  ;;  %v1555_v57 = vld [vmem:[#allocation13 + $0xb4] sm:$0xf0]  ;;  %v1505_v58 = vld [vmem:[#allocation13 + $0xb8] sm:$0xf0]  ;;  %1624 = vst [vmem:[#allocation13 + $0x68] sm:$0xff] %v1797_v43  }
  0x25   : > { %1234 = vmatpush.bf16.msra.mxu2 %v1520_v47  ;;  %v1504_v60 = vor.u32 %v1555_v57, %v1503_v54  ;;  %v1508_v61 = vor.u32 %v1553_v55, %v1505_v58  ;;  %v1479_v62 = vld [vmem:[#allocation13 + $0x80] sm:$0xf]  ;;  %v1548_v63 = vld [vmem:[#allocation13 + $0x84] sm:$0xf]  ;;  %1634 = vst [vmem:[#allocation13 + $0x78] sm:$0xff] %v1799_v46  }
  0x26   : > { %1247 = vmatpush.bf16.msra.mxu3 %v1524_v52  ;;  %v1550_v2 = vld [vmem:[#allocation13 + $0x8c] sm:$0xf0]  ;;  %v1481_v3 = vld [vmem:[#allocation13 + $0x90] sm:$0xf0]  ;;  %1599 = vst [vmem:[#allocation13 + $0x40] sm:$0xff] %v1792_v50  }
  0x27   : > { %1209 = vmatpush.bf16.msra.mxu0 %v1496_v49  ;;  %v1480_v5 = vor.u32 %v1550_v2, %v1479_v62  ;;  %v1484_v6 = vor.u32 %v1548_v63, %v1481_v3  ;;  %v1487_v7 = vld [vmem:[#allocation13 + $0x88] sm:$0xf]  ;;  %v1549_v8 = vld [vmem:[#allocation13 + $0x8c] sm:$0xf]  ;;  %1609 = vst [vmem:[#allocation13 + $0x50] sm:$0xff] %v1794_v56  }
  0x28   : > { %1222 = vmatpush.bf16.msra.mxu1 %v1500_v53  ;;  %v1551_v11 = vld [vmem:[#allocation13 + $0x94] sm:$0xf0]  ;;  %v1489_v12 = vld [vmem:[#allocation13 + $0x98] sm:$0xf0]  ;;  %1604 = vst [vmem:[#allocation13 + $0x48] sm:$0xff] %v1793_v59  }
  0x29   : > { %1235 = vmatpush.bf16.msra.mxu2 %v1504_v60  ;;  %v1488_v14 = vor.u32 %v1551_v11, %v1487_v7  ;;  %v1492_v15 = vor.u32 %v1549_v8, %v1489_v12  ;;  %v1463_v16 = vld [vmem:[#allocation13 + $0x60] sm:$0xf]  ;;  %v1544_v17 = vld [vmem:[#allocation13 + $0x64] sm:$0xf]  ;;  %1614 = vst [vmem:[#allocation13 + $0x58] sm:$0xff] %v1795_v0  }
  0x2a   : > { %1248 = vmatpush.bf16.msra.mxu3 %v1508_v61  ;;  %v1546_v19 = vld [vmem:[#allocation13 + $0x6c] sm:$0xf0]  ;;  %v1465_v20 = vld [vmem:[#allocation13 + $0x70] sm:$0xf0]  ;;  %1579 = vst [vmem:[#allocation13 + $0x20] sm:$0xff] %v1788_v4  }
  0x2b   : > { %1210 = vmatpush.bf16.msra.mxu0 %v1480_v5  ;;  %v1464_v22 = vor.u32 %v1546_v19, %v1463_v16  ;;  %v1468_v23 = vor.u32 %v1544_v17, %v1465_v20  ;;  %v1471_v24 = vld [vmem:[#allocation13 + $0x68] sm:$0xf]  ;;  %v1545_v25 = vld [vmem:[#allocation13 + $0x6c] sm:$0xf]  ;;  %1589 = vst [vmem:[#allocation13 + $0x30] sm:$0xff] %v1790_v9  }
  0x2c   : > { %1223 = vmatpush.bf16.msra.mxu1 %v1484_v6  ;;  %v1547_v28 = vld [vmem:[#allocation13 + $0x74] sm:$0xf0]  ;;  %v1473_v30 = vld [vmem:[#allocation13 + $0x78] sm:$0xf0]  ;;  %1584 = vst [vmem:[#allocation13 + $0x28] sm:$0xff] %v1789_v13  }
  0x2d   : > { %1236 = vmatpush.bf16.msra.mxu2 %v1488_v14  ;;  %v1472_v32 = vor.u32 %v1547_v28, %v1471_v24  ;;  %v1476_v33 = vor.u32 %v1545_v25, %v1473_v30  ;;  %v1447_v34 = vld [vmem:[#allocation13 + $0x40] sm:$0xf]  ;;  %v1540_v35 = vld [vmem:[#allocation13 + $0x44] sm:$0xf]  ;;  %1594 = vst [vmem:[#allocation13 + $0x38] sm:$0xff] %v1791_v18  }
  0x2e   : > { %1249 = vmatpush.bf16.msra.mxu3 %v1492_v15  ;;  %v1542_v37 = vld [vmem:[#allocation13 + $0x4c] sm:$0xf0]  ;;  %v1449_v38 = vld [vmem:[#allocation13 + $0x50] sm:$0xf0]  ;;  %226 = vst [vmem:[#allocation13] sm:$0xff] %v215_v21  }
  0x2f   : > { %1211 = vmatpush.bf16.msra.mxu0 %v1464_v22  ;;  %v1448_v29 = vor.u32 %v1542_v37, %v1447_v34  ;;  %v1452_v40 = vor.u32 %v1540_v35, %v1449_v38  ;;  %v1455_v41 = vld [vmem:[#allocation13 + $0x48] sm:$0xf]  ;;  %v1541_v42 = vld [vmem:[#allocation13 + $0x4c] sm:$0xf]  ;;  %1569 = vst [vmem:[#allocation13 + $0x10] sm:$0xff] %v1786_v26  }
  0x30   : > { %1224 = vmatpush.bf16.msra.mxu1 %v1468_v23  ;;  %v1543_v43 = vld [vmem:[#allocation13 + $0x54] sm:$0xf0]  ;;  %v1457_v44 = vld [vmem:[#allocation13 + $0x58] sm:$0xf0]  ;;  %1564 = vst [vmem:[#allocation13 + $0x8] sm:$0xff] %v1785_v31  }
  0x31   : > { %1237 = vmatpush.bf16.msra.mxu2 %v1472_v32  ;;  %v1456_v45 = vor.u32 %v1543_v43, %v1455_v41  ;;  %v1460_v46 = vor.u32 %v1541_v42, %v1457_v44  ;;  %v1431_v47 = vld [vmem:[#allocation13 + $0x20] sm:$0xf]  ;;  %v1536_v48 = vld [vmem:[#allocation13 + $0x24] sm:$0xf]  ;;  %1574 = vst [vmem:[#allocation13 + $0x18] sm:$0xff] %v1787_v36  }
  0x32   : > { %1250 = vmatpush.bf16.msra.mxu3 %v1476_v33  ;;  %v1538_v49 = vld [vmem:[#allocation13 + $0x2c] sm:$0xf0]  ;;  %v1433_v50 = vld [vmem:[#allocation13 + $0x30] sm:$0xf0]  ;;  %214 = vst [vmem:[#allocation12] sm:$0xf] %v211_v39 }
  0x33   : > { %1212 = vmatpush.bf16.msra.mxu0 %v1448_v29  ;;  %v1432_v51 = vor.u32 %v1538_v49, %v1431_v47  ;;  %v1436_v52 = vor.u32 %v1536_v48, %v1433_v50  ;;  %v1439_v53 = vld [vmem:[#allocation13 + $0x28] sm:$0xf]  ;;  %v1537_v54 = vld [vmem:[#allocation13 + $0x2c] sm:$0xf] }
  0x34   : > { %1225 = vmatpush.bf16.msra.mxu1 %v1452_v40  ;;  %v1539_v55 = vld [vmem:[#allocation13 + $0x34] sm:$0xf0]  ;;  %v1441_v56 = vld [vmem:[#allocation13 + $0x38] sm:$0xf0] }
  0x35   : > { %1238 = vmatpush.bf16.msra.mxu2 %v1456_v45  ;;  %v1440_v57 = vor.u32 %v1539_v55, %v1439_v53  ;;  %v1444_v58 = vor.u32 %v1537_v54, %v1441_v56  ;;  %v1415_v59 = vld [vmem:[#allocation13] sm:$0xf]  ;;  %v1532_v60 = vld [vmem:[#allocation13 + $0x4] sm:$0xf] }
  0x36   : > { %1251 = vmatpush.bf16.msra.mxu3 %v1460_v46  ;;  %v1534_v61 = vld [vmem:[#allocation13 + $0xc] sm:$0xf0]  ;;  %v1417_v62 = vld [vmem:[#allocation13 + $0x10] sm:$0xf0] }
  0x37   : > { %1213 = vmatpush.bf16.msra.mxu0 %v1432_v51  ;;  %v1416_v63 = vor.u32 %v1534_v61, %v1415_v59  ;;  %v1420_v0 = vor.u32 %v1532_v60, %v1417_v62  ;;  %v1423_v2 = vld [vmem:[#allocation13 + $0x8] sm:$0xf]  ;;  %v1533_v3 = vld [vmem:[#allocation13 + $0xc] sm:$0xf] }
  0x38   : > { %1226 = vmatpush.bf16.msra.mxu1 %v1436_v52  ;;  %v1535_v4 = vld [vmem:[#allocation13 + $0x14] sm:$0xf0]  ;;  %v1425_v5 = vld [vmem:[#allocation13 + $0x18] sm:$0xf0] }
  0x39   : > { %1239 = vmatpush.bf16.msra.mxu2 %v1440_v57  ;;  %v1424_v6 = vor.u32 %v1535_v4, %v1423_v2  ;;  %v1428_v7 = vor.u32 %v1533_v3, %v1425_v5  ;;  %v1034_v8 = vld [vmem:[#allocation12] sm:$0xf] }
  0x3a   : > { %1252 = vmatpush.bf16.msra.mxu3 %v1444_v58 }
  0x3b   : > { %1214 = vmatpush.bf16.msra.mxu0 %v1416_v63 }
  0x3c   : > { %1227 = vmatpush.bf16.msra.mxu1 %v1420_v0 }
  0x3d   : > { %1240 = vmatpush.bf16.msra.mxu2 %v1424_v6 }
  0x3e   : > { %1253 = vmatpush.bf16.msra.mxu3 %v1428_v7  ;;  %1525 = vmatmul.msk.bf16.vlgmr.msra.gmra.mxu0 %vm1203_vm2, %v1034_v8 }
  0x3f   : > { %1526 = vmatmul.msk.bf16.vlgmr.msra.gmra.mxu1 %vm1203_vm2, %v1034_v8 }
  0x40   : > { %1527 = vmatmul.msk.bf16.vlgmr.msra.gmra.mxu2 %vm1203_vm2, %v1034_v8 }
  0x41   : > { %1528 = vmatmul.msk.bf16.vlgmr.msra.gmra.mxu3 %vm1203_vm2, %v1034_v8 }
  0xbb   : > { %v1216_v9 = vpop.f32.mrf.mxu0 }
  0xbc   : > { %1259 = vst [vmem:[%s192_s26] sm:$0xff] %v1216_v9  ;;  %v1229_v10 = vpop.f32.mrf.mxu1 }
  0xbd   : > { %1260 = vst [vmem:[%s192_s26 + $0x8] sm:$0xff] %v1229_v10 }
  0xc3   : > { %v1242_v11 = vpop.f32.mrf.mxu2  ;;  %v1218_v12 = vpop.f32.mrf.mxu0 }
  0xc4   : > { %1261 = vst [vmem:[%s192_s26 + $0x10] sm:$0xff] %v1242_v11  ;;  %v1255_v13 = vpop.f32.mrf.mxu3  ;;  %v1231_v14 = vpop.f32.mrf.mxu1 }
  0xc5   : > { %1262 = vst [vmem:[%s192_s26 + $0x18] sm:$0xff] %v1255_v13 }
  0xcb   : > { %v1244_v15 = vpop.f32.mrf.mxu2 }
  0xcc   : > { %v1257_v16 = vpop.f32.mrf.mxu3 }
  0xcd PF: > { %s23_s16 = sadd.s32 1, %s1857_s16   ;;  %s1972_s14 = smov %s1853_s15 }
  0xce   : > { %p20_p5 = scmp.ge.s32.totalorder %s23_s16, 4   ;;  %s1973_s15 = smov %s1975_s1 }
  0xd0   :  { %22 = sbr.rel (!%p20_p5) target bundleno = 3 (0x3), region = 168 }

</bundles_post_ra>
